<compile_context>
chip_gen: v5e
topology: v5e:2x2
jax: 0.10.0
libtpu: 0.0.40
codegen_flags: <defaults>
</compile_context>

<pallas_src>
import jax
import jax.numpy as jnp
from jax.experimental import pallas as pl
from jax.experimental.pallas import tpu as pltpu


# --------------------------------------------------------------------------- #
# Planning helpers
# --------------------------------------------------------------------------- #
def _round_up(n, m):
    return ((n + m - 1) // m) * m


def _cdiv(a, b):
    return -(-a // b)


def _largest_divisor_leq(n, cap):
    cap = max(1, min(n, cap))
    for d in range(cap, 0, -1):
        if n % d == 0:
            return d
    return 1


def _vmem_capacity_bytes():
    """Physical VMEM of the current chip; conservative fallback = v7x (64 MiB)."""
    try:
        info = pltpu.get_tpu_info()
        cap = getattr(info, "vmem_capacity_bytes", None)
        if cap:
            return int(cap)
    except Exception:
        pass
    return 64 * 1024 * 1024


def _plan(B, C, S, itemsize):
    """Pick (b_tile, s_tile, vmem_limit) from the chip's VMEM budget.

    Accounting: input + output blocks, each double-buffered -> ~4x block bytes,
    plus the resident weight and small compiler scratch/temporaries.  We keep
    4x block well inside half the physical VMEM (v5e/v6e: 64 MiB usable,
    v7x: 32 MiB usable) and tell Mosaic the budget explicitly.
    """
    vmem_cap = _vmem_capacity_bytes()
    vmem_limit = min(vmem_cap // 2, 96 * 1024 * 1024)
    target_block_bytes = max(1 << 20, min(8 << 20, vmem_limit // 6))

    s_full = _round_up(S, 128)                      # lane-rounded spatial extent
    bytes_per_lane = max(1, C * itemsize)
    lane_cap = max(128, (target_block_bytes // bytes_per_lane) // 128 * 128)
    s_tile = min(s_full, lane_cap)                  # multiple of 128 -> lane-dense

    # If one batch's whole volume is far below the byte target, block over batch
    # too.  Restricted to C <= 32 so the in-kernel channel loop stays a short
    # unroll (larger C uses the MXU path with b_tile == 1).
    b_tile = 1
    if s_tile == s_full and C <= 32:
        per_batch = C * s_full * itemsize
        b_tile = _largest_divisor_leq(B, max(1, target_block_bytes // per_batch))

    # v7x has 2 TensorCores: keep >= 2 grid steps along the parallel axes
    # whenever the shape allows, so the second core isn't idle.
    if (B // b_tile) * _cdiv(S, s_tile) < 2:
        if b_tile > 1:
            b_tile = _largest_divisor_leq(B, max(1, b_tile // 2))
        elif s_full >= 256:
            s_tile = _round_up(_cdiv(s_full, 2), 128)

    return b_tile, s_tile, vmem_limit


# --------------------------------------------------------------------------- #
# Kernels
# --------------------------------------------------------------------------- #
def _sse3d_mxu_kernel(x_ref, w_ref, b_ref, o_ref):
    # x_ref/o_ref: (1, C, S_TILE) VMEM, input dtype
    # w_ref:       (1, C) VMEM, pre-cast to the input dtype in the wrapper
    # b_ref:       (1,)   f32 SMEM
    x = x_ref[0]                                           # (C, S_TILE)
    # Channel reduction on the otherwise idle MXU, f32 accumulation.
    logits = jnp.dot(w_ref[...], x,
                     preferred_element_type=jnp.float32) + b_ref[0]    # (1, S_TILE)
    squeeze = jax.nn.sigmoid(logits)                       # f32, runs on the EUP
    # Broadcast multiply stays in the input dtype (bf16 I/O stays bf16; ~1 ulp
    # vs a pure-f32 reference multiply).
    o_ref[0] = (x * squeeze.astype(x.dtype)).astype(o_ref.dtype)


def _make_sse3d_vpu_kernel(num_channels):
    def kernel(x_ref, w_ref, b_ref, o_ref):
        # x_ref/o_ref: (B_TILE, C, S_TILE) VMEM, input dtype
        # w_ref:       (C,) f32 SMEM scalars;  b_ref: (1,) f32 SMEM
        x = x_ref[...]
        # Short unrolled channel loop: one sublane slice * SMEM scalar per
        # channel, accumulated in f32 (matches Conv3d accumulation) without
        # ever materialising a full f32 copy of the block.
        acc = x[:, 0:1, :].astype(jnp.float32) * w_ref[0]
        for c in range(1, num_channels):
            acc = acc + x[:, c:c + 1, :].astype(jnp.float32) * w_ref[c]
        squeeze = jax.nn.sigmoid(acc + b_ref[0])           # (B_TILE, 1, S_TILE)
        o_ref[...] = (x * squeeze.astype(x.dtype)).astype(o_ref.dtype)
    return kernel


# --------------------------------------------------------------------------- #
# Wrapper
# --------------------------------------------------------------------------- #
def spatial_se_3d(x, conv_weight, conv_bias, *, donate_input=False):
    """
    x:           (B, C, D, H, W) float32 or bfloat16
    conv_weight: (1, C, 1, 1, 1)  (nn.Conv3d(C, 1, 1).weight)
    conv_bias:   (1,)             (nn.Conv3d(C, 1, 1).bias)
    returns:     (B, C, D, H, W), same dtype as x
    """
    B, C, D, H, W = x.shape
    S = D * H * W
    itemsize = jnp.dtype(x.dtype).itemsize
    b_tile, s_tile, vmem_limit = _plan(B, C, S, itemsize)

    # Flatten spatial dims (free reshape).  No padding / slicing passes: the
    # ragged last spatial tile is handled by masked edge stores in the pipeline.
    x_flat = x.reshape(B, C, S)
    bias = conv_bias.reshape(1).astype(jnp.float32)

    use_mxu = (b_tile == 1) and (C >= 8)
    if use_mxu:
        kernel = _sse3d_mxu_kernel
        # Pre-cast the resident weight once in the wrapper (bf16 inputs use a
        # bf16 weight on the MXU; small quantisation vs f32 Conv3d weights,
        # accumulation itself stays f32).
        w = conv_weight.reshape(1, C).astype(x.dtype)
        w_spec = pl.BlockSpec((1, C), lambda b, s: (0, 0))
    else:
        kernel = _make_sse3d_vpu_kernel(C)
        w = conv_weight.reshape(C).astype(jnp.float32)
        w_spec = pl.BlockSpec(memory_space=pltpu.MemorySpace.SMEM)

    grid = (B // b_tile, _cdiv(S, s_tile))

    # Advisory cost estimate so XLA schedules surrounding ops around this
    # long, memory-bound custom call.
    cost = pl.CostEstimate(
        flops=3 * B * C * S,                   # C mul + C add reduce + 1 mul / voxel-channel
        transcendentals=B * S,                 # one sigmoid per voxel
        bytes_accessed=2 * B * C * S * itemsize + C * itemsize,
    )

    out_flat = pl.pallas_call(
        kernel,
        out_shape=jax.ShapeDtypeStruct((B, C, S), x.dtype),
        grid=grid,
        in_specs=[
            pl.BlockSpec((b_tile, C, s_tile), lambda b, s: (b, 0, s)),
            w_spec,
            pl.BlockSpec(memory_space=pltpu.MemorySpace.SMEM),
        ],
        out_specs=pl.BlockSpec((b_tile, C, s_tile), lambda b, s: (b, 0, s)),
        compiler_params=pltpu.CompilerParams(
            # No cross-grid accumulation (channel reduction is intra-block), so
            # both axes are parallel -> v7x can shard the grid across its 2 TCs.
            dimension_semantics=("parallel", "parallel"),
            vmem_limit_bytes=vmem_limit,
        ),
        cost_estimate=cost,
        # Optional in-place update: halves peak HBM footprint when the caller
        # never reuses x afterwards (off by default, x is reused in the test).
        input_output_aliases=({0: 0} if donate_input else {}),
    )(x_flat, w, bias)

    return out_flat.reshape(B, C, D, H, W)


# --------------------------------------------------------------------------- #
# Reference + self-test
# --------------------------------------------------------------------------- #
def _reference(x, conv_weight, conv_bias):
    # Plain-JAX reference: 1x1x1 conv (channel dot) + sigmoid + multiply.
    C = x.shape[1]
    w = conv_weight.reshape(C)
    logits = jnp.einsum("bcdhw,c->bdhw", x, w) + conv_bias[0]
    squeeze = jax.nn.sigmoid(logits)[:, None]              # (B, 1, D, H, W)
    return x * squeeze


if __name__ == "__main__":
    root = jax.random.PRNGKey(0)

    def run_case(idx, B, C, D, H, W, dtype, tol):
        kx, kw, kb = jax.random.split(jax.random.fold_in(root, idx), 3)
        x32 = jax.random.normal(kx, (B, C, D, H, W), dtype=jnp.float32)
        conv_weight = jax.random.normal(kw, (1, C, 1, 1, 1), dtype=jnp.float32) * 0.5
        conv_bias = jax.random.normal(kb, (1,), dtype=jnp.float32) * 0.1

        x_in = x32.astype(dtype)
        y = jax.block_until_ready(spatial_se_3d(x_in, conv_weight, conv_bias))

        # Reference on the dtype-quantized input (isolates kernel error).
        y_ref = _reference(x_in.astype(jnp.float32), conv_weight, conv_bias)
        assert y.shape == (B, C, D, H, W), f"bad shape (case {idx})"
        assert y.dtype == dtype, f"bad dtype (case {idx})"
        assert jnp.allclose(y.astype(jnp.float32), y_ref, atol=tol, rtol=tol), (
            f"mismatch vs reference (case {idx})")

    # Case 0: tiny C, lane-aligned volume -> unrolled SMEM-scalar VPU path.
    run_case(0, B=2, C=4, D=4, H=8, W=8, dtype=jnp.float32, tol=1e-5)
    # Case 1: non-lane-aligned 7x7x7 volume, C=3 -> ragged last spatial tile
    #         (masked edge stores, no wrapper pad/slice passes).
    run_case(1, B=2, C=3, D=7, H=7, W=7, dtype=jnp.float32, tol=1e-5)
    # Case 2: larger C -> MXU reduction path, bf16 I/O with f32 accumulation.
    run_case(2, B=1, C=64, D=4, H=4, W=8, dtype=jnp.bfloat16, tol=5e-2)
    # Case 3: small per-batch volume -> batch-blocked tiles (b_tile > 1).
    run_case(3, B=4, C=8, D=4, H=8, W=8, dtype=jnp.float32, tol=1e-5)

    print("KERNEL_OK")
</pallas_src>

<mosaic_0001>
module attributes {stable_mosaic.version = 11 : i64} {
  func.func @kernel(%arg0: i32, %arg1: i32, %arg2: memref<1x4x256xf32, #tpu.memory_space<vmem>>, %arg3: memref<4xf32, #tpu.memory_space<smem>>, %arg4: memref<1xf32, #tpu.memory_space<smem>>, %arg5: memref<1x4x256xf32, #tpu.memory_space<vmem>>) attributes {dimension_semantics = [#tpu.dimension_semantics<parallel>, #tpu.dimension_semantics<parallel>], iteration_bounds = array<i64: 2, 1>, scalar_prefetch = 0 : i64, scratch_operands = 0 : i64, tpu.core_type = #tpu.core_type<tc>, window_params = [{transform_indices = @transform_0, window_bounds = array<i64: 1, 4, 256>}, {transform_indices = @transform_1, window_bounds = array<i64: 4>}, {transform_indices = @transform_2, window_bounds = array<i64: 1>}, {transform_indices = @transform_3, window_bounds = array<i64: 1, 4, 256>}]} {
    %c0 = arith.constant 0 : index
    %c0_0 = arith.constant 0 : index
    %c0_1 = arith.constant 0 : index
    %0 = vector.load %arg2[%c0, %c0_0, %c0_1] : memref<1x4x256xf32, #tpu.memory_space<vmem>>, vector<1x4x256xf32>
    %1 = vector.extract_strided_slice %0 {offsets = [0, 0, 0], sizes = [1, 1, 256], strides = [1, 1, 1]} : vector<1x4x256xf32> to vector<1x1x256xf32>
    %c0_2 = arith.constant 0 : index
    %2 = memref.load %arg3[%c0_2] : memref<4xf32, #tpu.memory_space<smem>>
    %3 = vector.broadcast %2 : f32 to vector<1x1x256xf32>
    %4 = arith.mulf %1, %3 : vector<1x1x256xf32>
    %5 = vector.extract_strided_slice %0 {offsets = [0, 1, 0], sizes = [1, 1, 256], strides = [1, 1, 1]} : vector<1x4x256xf32> to vector<1x1x256xf32>
    %c1 = arith.constant 1 : index
    %6 = memref.load %arg3[%c1] : memref<4xf32, #tpu.memory_space<smem>>
    %7 = vector.broadcast %6 : f32 to vector<1x1x256xf32>
    %8 = arith.mulf %5, %7 : vector<1x1x256xf32>
    %9 = arith.addf %4, %8 : vector<1x1x256xf32>
    %10 = vector.extract_strided_slice %0 {offsets = [0, 2, 0], sizes = [1, 1, 256], strides = [1, 1, 1]} : vector<1x4x256xf32> to vector<1x1x256xf32>
    %c2 = arith.constant 2 : index
    %11 = memref.load %arg3[%c2] : memref<4xf32, #tpu.memory_space<smem>>
    %12 = vector.broadcast %11 : f32 to vector<1x1x256xf32>
    %13 = arith.mulf %10, %12 : vector<1x1x256xf32>
    %14 = arith.addf %9, %13 : vector<1x1x256xf32>
    %15 = vector.extract_strided_slice %0 {offsets = [0, 3, 0], sizes = [1, 1, 256], strides = [1, 1, 1]} : vector<1x4x256xf32> to vector<1x1x256xf32>
    %c3 = arith.constant 3 : index
    %16 = memref.load %arg3[%c3] : memref<4xf32, #tpu.memory_space<smem>>
    %17 = vector.broadcast %16 : f32 to vector<1x1x256xf32>
    %18 = arith.mulf %15, %17 : vector<1x1x256xf32>
    %19 = arith.addf %14, %18 : vector<1x1x256xf32>
    %c0_3 = arith.constant 0 : index
    %20 = memref.load %arg4[%c0_3] : memref<1xf32, #tpu.memory_space<smem>>
    %21 = vector.broadcast %20 : f32 to vector<1x1x256xf32>
    %22 = arith.addf %19, %21 : vector<1x1x256xf32>
    %23 = arith.negf %22 : vector<1x1x256xf32>
    %24 = math.exp %23 : vector<1x1x256xf32>
    %cst = arith.constant 1.000000e+00 : f32
    %25 = vector.broadcast %cst : f32 to vector<1x1x256xf32>
    %26 = arith.addf %25, %24 : vector<1x1x256xf32>
    %27 = arith.divf %25, %26 : vector<1x1x256xf32>
    %28 = vector.broadcast %27 : vector<1x1x256xf32> to vector<1x4x256xf32>
    %29 = arith.mulf %0, %28 : vector<1x4x256xf32>
    %c0_4 = arith.constant 0 : index
    %c0_5 = arith.constant 0 : index
    %c0_6 = arith.constant 0 : index
    %30 = vector.load %arg5[%c0_4, %c0_5, %c0_6] : memref<1x4x256xf32, #tpu.memory_space<vmem>>, vector<1x4x256xf32>
    tpu.vector_store %arg5[%c0_4, %c0_5, %c0_6], %29 {strides = array<i32>} : memref<1x4x256xf32, #tpu.memory_space<vmem>>, vector<1x4x256xf32>,
    return
  }
  func.func @transform_0(%arg0: i32, %arg1: i32) -> (i32, i32, i32) {
    %c0_i32 = arith.constant 0 : i32
    %c0_i32_0 = arith.constant 0 : i32
    return %arg0, %c0_i32, %arg1 : i32, i32, i32
  }
  func.func @transform_1(%arg0: i32, %arg1: i32) -> i32 {
    %c0_i32 = arith.constant 0 : i32
    %c0_i32_0 = arith.constant 0 : i32
    return %c0_i32 : i32
  }
  func.func @transform_2(%arg0: i32, %arg1: i32) -> i32 {
    %c0_i32 = arith.constant 0 : i32
    %c0_i32_0 = arith.constant 0 : i32
    return %c0_i32 : i32
  }
  func.func @transform_3(%arg0: i32, %arg1: i32) -> (i32, i32, i32) {
    %c0_i32 = arith.constant 0 : i32
    %c0_i32_0 = arith.constant 0 : i32
    return %arg0, %c0_i32, %arg1 : i32, i32, i32
  }
}

</mosaic_0001>

<bundles_post_ra>
// kernel: tpu_custom_call.1
= control target key start
LH: loop header
LB: loop body
LE: loop exit
PB: predicated region body
PF: predicated region fallthrough
CT: control target
= control target key end

     0   :  { %s813_s0 = inlined_call_operand.hbm [shape: f32[2,4,256], index: 0, kind: input, shape index: {}]   ;;  %s814_s1 = inlined_call_operand.vmem [shape: f32[4], index: 1, kind: input, shape index: {}]   ;;  %s815_s2 = inlined_call_operand.<no memory space> [shape: f32[1], index: 2, kind: input, shape index: {}]   ;;  %s816_s3 = inlined_call_operand.hbm [shape: f32[2,4,256], index: 3, kind: output, shape index: {}]  }
   0x1   :  { %8 = sst [smem:[#allocation2]] %s815_s2 }
   0x2   :  { %9 = vsyncpa [#allocation4], 0 }
   0x3   :  { %11 = vsyncpa [#allocation4 + $0x1], 0 }
   0x4   :  { %12 = vsyncpa [#allocation6], 0 }
   0x5   :  { %13 = vsyncpa [#allocation5], 0 }
   0x6   :  { %15 = vsyncpa [#allocation5 + $0x1], 0  ;;  %s664_s14 = smov 0   ;;  %s666_s15 = smov 0  }
   0x7   :  { %s668_s16 = smov 0   ;;  %s670_s17 = smov 0  }
   0x8   :  { %s672_s18 = smov 0   ;;  %s674_s19 = smov 0  }
   0x9 LB: > { %s404_s2 = sadd.s32 4294967295, %s638_s19   ;;  %s405_s20 = sadd.s32 4294967294, %s638_s19   ;;  %s638_s19 = sphi %s674_s19, %s21_s19   ;;  %s634_s18 = sphi %s672_s18, %s828_s18   ;;  %s630_s17 = sphi %s670_s17, %s827_s17   ;;  %s626_s16 = sphi %s668_s16, %s826_s16   ;;  %s622_s15 = sphi %s666_s15, %s825_s15   ;;  %s618_s14 = sphi %s664_s14, %s824_s14  }
   0xa   : > { %p55_p0 = scmp.ne.s32.totalorder %s622_s15, %s618_s14  ;;  %p698_p1 = scmp.eq.s32.totalorder %s404_s2, 0 }
   0xb   : > { %p702_p2 = scmp.eq.s32.totalorder %s404_s2, 1  ;;  %p129_p3 = scmp.eq.s32.totalorder %s405_s20, 1 }
   0xc   : > { %p708_p4 = por %p698_p1, %p55_p0  ;;  %p406_p5 = scmp.ge.s32.totalorder %s638_s19, 1 }
   0xd   : > { %p713_p6 = por %p129_p3, %p55_p0  ;;  %p136_p7 = scmp.lt.s32.totalorder %s638_s19, 3 }
   0xe   : > { %s148_s27 = sshll.u32 %s814_s1, 4  ;;  %s33_s29 = sadd.s32 1, %s634_s18  ;;  %s149_s27 = int_to_ptr.vmem [resolvable:$true] %s148_s27 }
   0xf   : > { %p721_p8 = pnand %p406_p5, %p136_p7  ;;  %s42_s30 = sadd.s32 1, %s626_s16 }
  0x10   : > { %p35_p12 = scmp.ge.s32.totalorder %s33_s29, 2  ;;  %s640_s4 = smov [#allocation7]  }
  0x11   : > { %p438_p10 = pneg %p721_p8  ;;  %p49_p13 = scmp.ne.s32.totalorder %s626_s16, %s622_s15 }
  0x12   : > { %s830_s29 = smov (%p35_p12, %s33_s29), 0  ;;  %p50_p0 = scmp.eq.s32.totalorder %s638_s19, 0 }
  0x13   : > { %p439_p11 = pnand %p438_p10, %p698_p1  ;;  %s37_s5 = ssub.s32 %s634_s18, %s830_s29 }
  0x14   : > { %p451_p3 = scmp.lt.s32.totalorder %s638_s19, 2  ;;  %p40_p5 = scmp.eq.s32.totalorder %s37_s5, 0 }
  0x15   : > { %441 = dma.vmem_to_smem (!%p439_p11), %s149_s27, 16, %s640_s4, [#allocation6]  }
  0x16   : > { %p51_p7 = por %p50_p0, %p49_p13  ;;  %p742_p9 = por %p702_p2, %p49_p13 }
  0x17   : > { %s162_s7 = sand.u32 1, %s626_s16   ;;  %s428_s10 = sshll.u32 %s634_s18, 3 }
  0x18   : > { %s748_s8 = scalar_select %p40_p5, %s626_s16, %s42_s30  }
  0x19   : > { %s409_s9 = sshll.u32 %s162_s7, 3  ;;  %s173_s13 = scalar_lea.hbm %s813_s0, %s428_s10 }
  0x1a   : > { %s166_s2 = scalar_lea.vmem [#allocation3], %s409_s9  ;;  %s175_s25 = sshll.u32 %s173_s13, 4  ;;  %s176_s25 = int_to_ptr.hbm [resolvable:$true] %s175_s25 }
  0x1b   : > { %s177_s20 = sshll.u32 %s166_s2, 4  ;;  %p443_p10 = pnand %p451_p3, %p51_p7  ;;  %s178_s20 = int_to_ptr.vmem [resolvable:$true] %s177_s20 }
  0x1c   : > { %s163_s22 = scalar_lea.sflag [#allocation4], %s162_s7  ;;  %186 = sbr.rel (%p721_p8) target bundleno = 98 (0x62), region = 32 }
  0x1d   : > { %445 = dma.hbm_to_vmem [thread:$0]  (!%p443_p10), %s176_s25, 128, %s178_s20, %s163_s22  }
  0x1e   : > { %s759_s26 = sand.u32 (!%p721_p8), 1, %s622_s15  }
  0x1f   : > { %s413_s27 = sshll.u32 (!%p721_p8), %s759_s26, 3  ;;  %s189_s30 = scalar_lea.sflag (!%p721_p8), [#allocation4], %s759_s26 }
  0x20   : > { %s192_s4 = scalar_lea.vmem (!%p721_p8), [#allocation3], %s413_s27 }
  0x21   : > { %605 = dma.done.wait (%p708_p4), %s189_s30, 128  }
  0x22   : > { %607 = vsyncadd (%p708_p4), %s189_s30, 4294967168 }
  0x23   : > { %609 = dma.done.wait (%p698_p1), [#allocation6], 16  }
  0x24   : > { %611 = vsyncadd (%p698_p1), [#allocation6], 4294967280 }
  0x25   : > { %203 = sfence }
  0x26   : > { %s225_s28 = sld [smem:[#allocation7]]  ;;  %v224_v0 = vld [vmem:[%s192_s4] sm:$0xff]  ;;  %s429_s21 = sshll.u32 %s630_s17, 3  ;;  %vm284_vm4 = vcmask 1043456  }
  0x27   : > { %s416_s5 = sld [smem:[#allocation7 + $0x1]]  ;;  %s303_s12 = scalar_lea.hbm %s816_s3, %s429_s21 }
  0x28   : > { %s418_s7 = sld [smem:[#allocation7 + $0x2]]  ;;  %s221_s13 = scalar_lea.vmem [#allocation8], %s413_s27 }
  0x29   : > { %s420_s9 = sld [smem:[#allocation7 + $0x3]]  ;;  %s305_s2 = sshll.u32 %s221_s13, 4  ;;  %s306_s2 = int_to_ptr.vmem [resolvable:$true] %s305_s2 }
  0x2a   : > { %s252_s10 = sld [smem:[#allocation2]]  ;;  %s307_s20 = sshll.u32 %s303_s12, 4  ;;  %s308_s20 = int_to_ptr.hbm [resolvable:$true] %s307_s20 }
  0x2b   : > { %s290_s17 = scalar_lea.sflag [#allocation5], %s759_s26  ;;  %s566_s25 = sshra.s32 %s308_s20, 4  ;;  %s567_s25 = int_to_ptr.hbm [resolvable:$true] %s566_s25 }
  0x2c   : > { %v226_v1 = vstv %s225_s28  ;;  %s568_s22 = scalar_lea.hbm %s567_s25, 8  ;;  %s572_s27 = scalar_lea.hbm %s816_s3, 16 }
  0x2d   : > { %v229_v2 = vstv %s416_s5  ;;  %v227_v3 = vmul.f32 %v226_v1, %v224_v0  ;;  %p569_p1 = scmp.ne.s32.totalorder %s567_s25, %s568_s22  ;;  %p573_p8 = scmp.lt.s32.totalorder %s567_s25, %s816_s3 }
  0x2e   : > { %v230_v4 = vmul.f32 %v229_v2, %v224_v0  ;;  %v237_v5 = vstv %s418_s7  ;;  %p574_p11 = scmp.lt.s32.totalorder %s572_s27, %s568_s22 }
  0x2f   : > { %v238_v6 = vmul.f32 %v237_v5, %v224_v0  ;;  %v245_v7 = vstv %s420_s9  ;;  %p570_p2 = pnand %p569_p1, %p742_p9 }
  0x30   : > { %v417_v8 = vrot.slane %v230_v4, 9  ;;  %v246_v9 = vmul.f32 %v245_v7, %v224_v0  ;;  %v253_v14 = vstv %s252_s10  ;;  %p575_p12 = por %p574_p11, %p573_p8 }
  0x31   : > { %v419_v10 = vrot.slane %v238_v6, 10  ;;  %p571_p4 = pneg %p570_p2 }
  0x32   : > { %v235_v11 = vadd.f32 %v417_v8, %v227_v3  ;;  %v421_v12 = vrot.slane %v246_v9, 11 }
  0x33   : > { %p576_p13 = pnand %p575_p12, %p571_p4 }
  0x34   : > { %v243_v13 = vadd.f32 %v419_v10, %v235_v11 }
  0x36   : > { %v251_v15 = vadd.f32 %v421_v12, %v243_v13 }
  0x38   : > { %v254_v16 = vadd.f32 %v253_v14, %v251_v15 }
  0x3a   : > { %v422_v17 = vmul.f32 -1.442695, %v254_v16 }
  0x3c   : > { %503 = vpow2.f32 %v422_v17 }
  0x42   : > { %v504_v18 = vpop.eup %503 }
  0x43   : > { %v258_v19 = vadd.f32 1.0, %v504_v18 }
  0x45   : > { %505 = vrcp.f32 %v258_v19  ;;  %v270_v22 = vand.u32 2147483648, %v258_v19  ;;  %vm264_vm0 = vweird.f32 %v258_v19  ;;  %v268_v24 = vand.u32 2147483647, %v258_v19 }
  0x47   : > { %v271_v26 = vor.u32 1.1754944e-38, %v270_v22  ;;  %vm269_vm3 = vcmp.eq.f32.partialorder %v268_v24, 8.507059e+37 }
  0x4b   : > { %v506_v20 = vpop.eup %505 }
  0x4c   : > { %v260_v21 = vmul.f32 %v506_v20, %v258_v19  ;;  %vm265_vm1 = vweird.f32 %v506_v20 }
  0x4d   : > { %vm266_vm2 = vmor %vm264_vm0, %vm265_vm1 }
  0x4e   : > { %v261_v23 = vsub.f32 1.0, %v260_v21 }
  0x50   : > { %v262_v25 = vmul.f32 %v506_v20, %v261_v23 }
  0x52   : > { %v263_v27 = vadd.f32 %v506_v20, %v262_v25 }
  0x54   : > { %v267_v28 = vsel %vm266_vm2, %v506_v20, %v263_v27 }
  0x55   : > { %v272_v29 = vsel %vm269_vm3, %v271_v26, %v267_v28 }
  0x56   : > { %v275_v30 = vperm.slane %v272_v29, 0  ;;  %v276_v31 = vperm.slane %v272_v29, 4 }
  0x58   : > { %v279_v32 = vperm.slane %v275_v30, 0  ;;  %v280_v33 = vperm.slane %v276_v31, 0 }
  0x5a   : > { %v283_v34 = vrot.slane %v280_v33, 4 }
  0x5c   : > { %v285_v35 = vsel %vm284_vm4, %v279_v32, %v283_v34 }
  0x5d   : > { %v287_v36 = vmul.f32 %v285_v35, %v224_v0 }
  0x5f   : > { %288 = vst [vmem:[%s221_s13] sm:$0xff] %v287_v36 }
  0x60   : > { %579 = shalt.err (!%p576_p13)
}
  0x61   : > { %436 = dma.vmem_to_hbm [thread:$0]  (%p742_p9), %s306_s2, 128, %s308_s20, %s290_s17  }
  0x62 PF: > { %s319_s26 = sand.u32 1, %s618_s14   ;;  %p823_p0 = scmp.ge.s32.totalorder %s638_s19, 2 }
  0x63   : > { %s320_s7 = scalar_lea.sflag [#allocation5], %s319_s26 }
  0x64   : > { %p447_p3 = pnand %p823_p0, %p713_p6 }
  0x66   : > { %p448_p5 = pneg %p447_p3 }
  0x68   : > { %613 = dma.done.wait (%p448_p5), %s320_s7, 128  }
  0x69   : > { %615 = vsyncadd (%p448_p5), %s320_s7, 4294967168  ;;  %s21_s19 = sadd.s32 1, %s638_s19   ;;  %s824_s14 = smov %s622_s15 }
  0x6a   : > { %p18_p7 = scmp.ge.s32.totalorder %s21_s19, 4   ;;  %s825_s15 = smov %s626_s16 }
  0x6b   : > { %s826_s16 = smov %s748_s8  ;;  %s827_s17 = smov %s634_s18 }
  0x6c   : > { %s828_s18 = smov %s830_s29  ;;  %20 = sbr.rel (!%p18_p7) target bundleno = 9 (0x9), region = 82 }
  0x71   :  { %326 = vsyncpa [#allocation4], 1 }
  0x72   :  { %328 = vsyncpa [#allocation4 + $0x1], 1 }
  0x73   :  { %329 = vsyncpa [#allocation5], 1 }
  0x74   :  { %331 = vsyncpa [#allocation5 + $0x1], 1 }
  0x75   :  { %332 = vsyncpa [#allocation6], 1 }
  0x76   :  { %334 = vsyncpa [#allocation6 + $0x1], 1 }

</bundles_post_ra>
